<compile_context>
chip_gen: v7x
topology: tpu7x:2x2x1
jax: 0.10.0
libtpu: 0.0.40
codegen_flags: <defaults>
</compile_context>

<pallas_src>
import numpy as np
import jax
import jax.numpy as jnp
from jax import lax
from jax.experimental import pallas as pl
from jax.experimental.pallas import tpu as pltpu


_LANE = 128


def _round_up(x, m):
    return ((x + m - 1) // m) * m


def _transform_kernel(vn_ref, rt_ref, out_ref):
    """One grid step = one (column-group tile, batch block).

    vn_ref  : VMEM f32 (6, S, 128)         -- ch 0..2 vertex xyz, 3..5 normal xyz;
                                              each channel plane is a dense (S,128) tile.
    rt_ref  : VMEM f32 (B_blk, S, 12)      -- per (batch, 128-col group): 9 R (row-major) + 3 t.
    out_ref : VMEM     (B_blk, 6, S, 128)  -- transformed rows, channel-first.
    """
    vx = vn_ref[0]
    vy = vn_ref[1]
    vz = vn_ref[2]
    nx = vn_ref[3]
    ny = vn_ref[4]
    nz = vn_ref[5]
    od = out_ref.dtype
    n_b = out_ref.shape[0]

    def body(b, carry):
        rt = rt_ref[b]                                  # (S, 12)
        r00 = rt[:, 0:1]
        r01 = rt[:, 1:2]
        r02 = rt[:, 2:3]
        r10 = rt[:, 3:4]
        r11 = rt[:, 4:5]
        r12 = rt[:, 5:6]
        r20 = rt[:, 6:7]
        r21 = rt[:, 7:8]
        r22 = rt[:, 8:9]
        tx = rt[:, 9:10]
        ty = rt[:, 10:11]
        tz = rt[:, 11:12]
        # Vertices: R @ v + t (padded zero columns become t -> stripped in wrapper).
        out_ref[b, 0] = (r00 * vx + r01 * vy + r02 * vz + tx).astype(od)
        out_ref[b, 1] = (r10 * vx + r11 * vy + r12 * vz + ty).astype(od)
        out_ref[b, 2] = (r20 * vx + r21 * vy + r22 * vz + tz).astype(od)
        # Normals: R @ n (R orthonormal -> same as inverse-transpose).
        out_ref[b, 3] = (r00 * nx + r01 * ny + r02 * nz).astype(od)
        out_ref[b, 4] = (r10 * nx + r11 * ny + r12 * nz).astype(od)
        out_ref[b, 5] = (r20 * nx + r21 * ny + r22 * nz).astype(od)
        return carry

    if n_b <= 8:
        # Small batch blocks: fully static unroll (bounded live range).
        for b in range(n_b):
            body(b, 0)
    else:
        lax.fori_loop(0, n_b, body, 0)


def _pallas_transform(vn, rt_grp, s_groups, b_blk, out_dtype):
    """vn: [6, T, 128] f32; rt_grp: [B_pad, T, 12] f32 -> [B_pad, 6, T, 128]."""
    t_pad = vn.shape[1]
    b_pad = rt_grp.shape[0]
    grid = (t_pad // s_groups, b_pad // b_blk)  # batch innermost -> vn tile DMA elided across b
    return pl.pallas_call(
        _transform_kernel,
        out_shape=jax.ShapeDtypeStruct((b_pad, 6, t_pad, _LANE), out_dtype),
        grid=grid,
        in_specs=[
            pl.BlockSpec((6, s_groups, _LANE), lambda ti, bi: (0, ti, 0)),
            pl.BlockSpec((b_blk, s_groups, 12), lambda ti, bi: (bi, ti, 0)),
        ],
        out_specs=pl.BlockSpec((b_blk, 6, s_groups, _LANE),
                               lambda ti, bi: (bi, 0, ti, 0)),
        compiler_params=pltpu.CompilerParams(
            dimension_semantics=("parallel", "parallel")),
    )(vn, rt_grp)


class ObjectGroupLayerPallas:
    """JAX/Pallas port of ObjectGroupLayer (forward pass)."""

    def __init__(self, verts, faces, normals, block_groups=8, max_batch_block=256,
                 out_dtype=jnp.float32):
        # block_groups: 128-column groups per compute tile; must be a multiple of 8
        # (8, 128)-tiling rule).  max_batch_block caps the batch block so the
        # double-buffered output block (~2 * B_blk * 6 * S * 128 * 4 B) stays well
        # under the scoped VMEM limit on every generation (incl. v7x's 64 MiB).
        assert block_groups % 8 == 0 and block_groups > 0
        assert max_batch_block >= 1
        self._S = int(block_groups)
        self._max_batch_block = int(max_batch_block)
        self._out_dtype = out_dtype

        self._num_obj = len(verts)
        self._num_verts = [int(v.shape[0]) for v in verts]
        # Per-object padding granularity = one lane group (128 columns).
        self._num_groups = [(n + _LANE - 1) // _LANE for n in self._num_verts]
        self._grp_off = np.cumsum([0] + self._num_groups[:-1]).astype(np.int64).tolist() \
            if self._num_obj > 0 else []
        t_full = int(sum(self._num_groups))

        # Merged channel-first slab [6, T, 128]: rows 0..2 verts, 3..5 normals.
        if t_full > 0:
            vn_np = np.zeros((6, t_full, _LANE), np.float32)
            for i in range(self._num_obj):
                nv = self._num_verts[i]
                ng = self._num_groups[i]
                if nv == 0:
                    continue
                flat = np.zeros((6, ng * _LANE), np.float32)
                flat[0:3, :nv] = np.asarray(verts[i], np.float32).T
                flat[3:6, :nv] = np.asarray(normals[i], np.float32).T
                g0 = self._grp_off[i]
                vn_np[:, g0:g0 + ng, :] = flat.reshape(6, ng, _LANE)
            self._VN = jnp.asarray(vn_np)
        else:
            self._VN = jnp.zeros((6, 0, _LANE), jnp.float32)

        # Per-inds cached (slab, group->object ids, valid column gather, N_total).
        self._cache = {}
        if self._num_obj > 0:
            self._prepare(tuple(range(self._num_obj)))

        # Concatenated faces with per-object vertex offsets ('f' buffer).
        f_parts, offset = [], 0
        for i in range(self._num_obj):
            if i > 0:
                offset += self._num_verts[i - 1]
            f_parts.append(np.asarray(faces[i], np.int64) + offset)
        self.f = (jnp.asarray(np.concatenate(f_parts, axis=0))
                  if f_parts else jnp.zeros((0, 3), jnp.int64))
        self._f_numel = [int(np.asarray(f).size) for f in faces]

    # ---- properties mirroring the PyTorch module ------------------------------
    @property
    def num_obj(self):
        return self._num_obj

    @property
    def num_verts(self):
        return self._num_verts

    @property
    def count(self):
        return list(self._f_numel)

    # ---- pose helpers ----------------------------------------------------------
    def pose2rt(self, pose):
        O = self._num_obj
        p6 = pose[:, : 6 * O].reshape(pose.shape[0], O, 6)
        return p6[..., 0:3], p6[..., 3:6]

    @staticmethod
    def _rv2dcm(rv):
        """Axis-angle [..., 3] -> DCM [..., 3, 3] (torch-style eps handling)."""
        eps = 1e-8
        angle = jnp.linalg.norm(rv + eps, axis=-1)
        ax = rv[..., 0] / angle
        ay = rv[..., 1] / angle
        az = rv[..., 2] / angle
        z = jnp.zeros_like(angle)
        K = jnp.stack(
            [jnp.stack([z, -az, ay], axis=-1),
             jnp.stack([az, z, -ax], axis=-1),
             jnp.stack([-ay, ax, z], axis=-1)],
            axis=-2,
        )
        s = jnp.sin(angle)[..., None, None]
        c = jnp.cos(angle)[..., None, None]
        I = jnp.eye(3, dtype=rv.dtype)
        return I + s * K + (1.0 - c) * jnp.matmul(K, K)

    # ---- static per-inds layout data --------------------------------------------
    def _prepare(self, inds):
        if inds in self._cache:
            return self._cache[inds]
        s = self._S
        t_sel = int(sum(self._num_groups[i] for i in inds))
        n_total = int(sum(self._num_verts[i] for i in inds))
        if t_sel == 0 or n_total == 0:
            entry = (None, None, None, 0)
            self._cache[inds] = entry
            return entry
        t_pad = _round_up(t_sel, s)

        if list(inds) == list(range(self._num_obj)):
            parts = [self._VN]
        else:
            parts = [self._VN[:, self._grp_off[i]:self._grp_off[i] + self._num_groups[i], :]
                     for i in inds if self._num_groups[i] > 0]
        if t_pad > t_sel:
            parts.append(jnp.zeros((6, t_pad - t_sel, _LANE), jnp.float32))
        slab = parts[0] if len(parts) == 1 else jnp.concatenate(parts, axis=1)

        obj_ids = np.zeros((t_pad,), np.int32)   # pad groups -> object 0 (output dropped)
        col_parts = []
        g = 0
        for i in inds:
            ng = self._num_groups[i]
            obj_ids[g:g + ng] = i
            col_parts.append(g * _LANE + np.arange(self._num_verts[i], dtype=np.int64))
            g += ng
        col_idx = np.concatenate(col_parts) if col_parts else np.zeros((0,), np.int64)
        contiguous = bool(np.array_equal(col_idx, np.arange(n_total)))
        entry = (slab,
                 jnp.asarray(obj_ids),
                 None if contiguous else jnp.asarray(col_idx.astype(np.int32)),
                 n_total)
        self._cache[inds] = entry
        return entry

    # ---- forward -----------------------------------------------------------------
    def forward(self, p, inds=None):
        if inds is None:
            inds = range(self._num_obj)
        inds = tuple(int(i) for i in inds)
        B = int(p.shape[0])

        if len(inds) == 0:
            z = jnp.zeros((B, 0, 3), self._out_dtype)
            return z, z

        slab, obj_ids, col_idx, n_total = self._prepare(inds)
        if n_total == 0:
            z = jnp.zeros((B, 0, 3), self._out_dtype)
            return z, z

        # Tiny per-(batch, object) pose math (O(B*O*12) scalars) in plain JAX glue.
        O = self._num_obj
        r, t = self.pose2rt(p)                                   # [B, O, 3] each
        R = self._rv2dcm(r)                                      # [B, O, 3, 3]
        rt = jnp.concatenate([R.reshape(B, O, 9), t], axis=-1).astype(jnp.float32)
        # Per-128-column-group R|t rows (handles multiple objects per compute tile).
        rt_grp = jnp.take(rt, obj_ids, axis=1)                   # [B, T_pad, 12]

        # Batch blocking (fold batch into the kernel block; pad batch if needed).
        n_bblk = -(-B // self._max_batch_block)
        b_blk = -(-B // n_bblk)
        b_pad = b_blk * n_bblk
        if b_pad != B:
            rt_grp = jnp.pad(rt_grp, ((0, b_pad - B), (0, 0), (0, 0)))

        out = _pallas_transform(slab, rt_grp, self._S, b_blk, self._out_dtype)
        # out: [B_pad, 6, T_pad, 128] channel-first, lane-dense.
        out = out.reshape(b_pad, 6, -1)[:B]                      # free reshape + batch un-pad
        if col_idx is None:
            out = out[:, :, :n_total]                            # already contiguous
        else:
            out = jnp.take(out, col_idx, axis=2)                 # single gather strips pads
        vn_out = jnp.transpose(out, (0, 2, 1))                   # ONE transpose -> [B, N, 6]
        return vn_out[..., 0:3], vn_out[..., 3:6]

    __call__ = forward


def _np_reference(p, verts_list, normals_list, inds):
    """Independent NumPy float64 reference (Rodrigues with torch-style eps)."""
    B = p.shape[0]
    v_all, n_all = [], []
    for b in range(B):
        vb, nb = [], []
        for i in inds:
            r = np.asarray(p[b, 6 * i:6 * i + 3], np.float64)
            t = np.asarray(p[b, 6 * i + 3:6 * i + 6], np.float64)
            angle = np.linalg.norm(r + 1e-8)
            ax = r / angle
            K = np.array([[0.0, -ax[2], ax[1]],
                          [ax[2], 0.0, -ax[0]],
                          [-ax[1], ax[0], 0.0]])
            R = np.eye(3) + np.sin(angle) * K + (1.0 - np.cos(angle)) * (K @ K)
            vb.append(np.asarray(verts_list[i], np.float64) @ R.T + t)
            nb.append(np.asarray(normals_list[i], np.float64) @ R.T)
        v_all.append(np.concatenate(vb, axis=0))
        n_all.append(np.concatenate(nb, axis=0))
    return np.stack(v_all), np.stack(n_all)


if __name__ == "__main__":
    key = jax.random.PRNGKey(0)
    num_obj = 3
    batch = 2
    vert_counts = [200, 56, 150]
    face_counts = [120, 44, 90]

    verts_list, faces_list, normals_list = [], [], []
    for nv, nf in zip(vert_counts, face_counts):
        key, k1, k2 = jax.random.split(key, 3)
        v = np.asarray(jax.random.normal(k1, (nv, 3)), dtype=np.float32)
        n = np.asarray(jax.random.normal(k2, (nv, 3)), dtype=np.float32)
        n = n / (np.linalg.norm(n, axis=-1, keepdims=True) + 1e-8)
        f = (np.arange(nf * 3, dtype=np.int64).reshape(nf, 3)) % nv
        verts_list.append(v)
        normals_list.append(n)
        faces_list.append(f)

    layer = ObjectGroupLayerPallas(verts_list, faces_list, normals_list)

    key, kp = jax.random.split(key)
    p = jax.random.normal(kp, (batch, 6 * num_obj), dtype=jnp.float32)

    # Full object set (static in-kernel batch loop path).
    v_out, n_out = layer(p)
    v_out = jax.block_until_ready(v_out)
    n_out = jax.block_until_ready(n_out)

    p_np = np.asarray(p)
    v_ref, n_ref = _np_reference(p_np, verts_list, normals_list, list(range(num_obj)))
    assert v_out.shape == (batch, sum(vert_counts), 3)
    assert n_out.shape == (batch, sum(vert_counts), 3)
    assert np.allclose(np.asarray(v_out), v_ref, atol=1e-4, rtol=1e-4)
    assert np.allclose(np.asarray(n_out), n_ref, atol=1e-4, rtol=1e-4)

    # Subset / reordered objects path (inds argument of the PyTorch forward).
    sub = [2, 0]
    v_sub, n_sub = layer(p, inds=sub)
    v_sub = jax.block_until_ready(v_sub)
    n_sub = jax.block_until_ready(n_sub)
    v_ref_s, n_ref_s = _np_reference(p_np, verts_list, normals_list, sub)
    assert v_sub.shape == (batch, vert_counts[2] + vert_counts[0], 3)
    assert np.allclose(np.asarray(v_sub), v_ref_s, atol=1e-4, rtol=1e-4)
    assert np.allclose(np.asarray(n_sub), n_ref_s, atol=1e-4, rtol=1e-4)

    # Larger batch exercises the fori_loop batch-block path inside the kernel.
    key, kp2 = jax.random.split(key)
    p_big = jax.random.normal(kp2, (9, 6 * num_obj), dtype=jnp.float32)
    v_big, n_big = layer(p_big)
    v_big = jax.block_until_ready(v_big)
    n_big = jax.block_until_ready(n_big)
    v_ref_b, n_ref_b = _np_reference(np.asarray(p_big), verts_list, normals_list,
                                     list(range(num_obj)))
    assert np.allclose(np.asarray(v_big), v_ref_b, atol=1e-4, rtol=1e-4)
    assert np.allclose(np.asarray(n_big), n_ref_b, atol=1e-4, rtol=1e-4)

    print("KERNEL_OK")
</pallas_src>

<mosaic_0001>
module attributes {stable_mosaic.version = 11 : i64} {
  func.func @_transform_kernel(%arg0: i32, %arg1: i32, %arg2: memref<6x8x128xf32, #tpu.memory_space<vmem>>, %arg3: memref<2x8x12xf32, #tpu.memory_space<vmem>>, %arg4: memref<2x6x8x128xf32, #tpu.memory_space<vmem>>) attributes {dimension_semantics = [#tpu.dimension_semantics<parallel>, #tpu.dimension_semantics<parallel>], iteration_bounds = array<i64: 1, 1>, scalar_prefetch = 0 : i64, scratch_operands = 0 : i64, tpu.core_type = #tpu.core_type<tc>, window_params = [{transform_indices = @transform_0, window_bounds = array<i64: 6, 8, 128>}, {transform_indices = @transform_1, window_bounds = array<i64: 2, 8, 12>}, {transform_indices = @transform_2, window_bounds = array<i64: 2, 6, 8, 128>}]} {
    %c0 = arith.constant 0 : index
    %c0_0 = arith.constant 0 : index
    %c0_1 = arith.constant 0 : index
    %0 = vector.load %arg2[%c0, %c0_0, %c0_1] : memref<6x8x128xf32, #tpu.memory_space<vmem>>, vector<1x8x128xf32>
    %1 = vector.shape_cast %0 : vector<1x8x128xf32> to vector<8x128xf32>
    %c1 = arith.constant 1 : index
    %c0_2 = arith.constant 0 : index
    %c0_3 = arith.constant 0 : index
    %2 = vector.load %arg2[%c1, %c0_2, %c0_3] : memref<6x8x128xf32, #tpu.memory_space<vmem>>, vector<1x8x128xf32>
    %3 = vector.shape_cast %2 : vector<1x8x128xf32> to vector<8x128xf32>
    %c2 = arith.constant 2 : index
    %c0_4 = arith.constant 0 : index
    %c0_5 = arith.constant 0 : index
    %4 = vector.load %arg2[%c2, %c0_4, %c0_5] : memref<6x8x128xf32, #tpu.memory_space<vmem>>, vector<1x8x128xf32>
    %5 = vector.shape_cast %4 : vector<1x8x128xf32> to vector<8x128xf32>
    %c3 = arith.constant 3 : index
    %c0_6 = arith.constant 0 : index
    %c0_7 = arith.constant 0 : index
    %6 = vector.load %arg2[%c3, %c0_6, %c0_7] : memref<6x8x128xf32, #tpu.memory_space<vmem>>, vector<1x8x128xf32>
    %7 = vector.shape_cast %6 : vector<1x8x128xf32> to vector<8x128xf32>
    %c4 = arith.constant 4 : index
    %c0_8 = arith.constant 0 : index
    %c0_9 = arith.constant 0 : index
    %8 = vector.load %arg2[%c4, %c0_8, %c0_9] : memref<6x8x128xf32, #tpu.memory_space<vmem>>, vector<1x8x128xf32>
    %9 = vector.shape_cast %8 : vector<1x8x128xf32> to vector<8x128xf32>
    %c5 = arith.constant 5 : index
    %c0_10 = arith.constant 0 : index
    %c0_11 = arith.constant 0 : index
    %10 = vector.load %arg2[%c5, %c0_10, %c0_11] : memref<6x8x128xf32, #tpu.memory_space<vmem>>, vector<1x8x128xf32>
    %11 = vector.shape_cast %10 : vector<1x8x128xf32> to vector<8x128xf32>
    %c0_12 = arith.constant 0 : index
    %c0_13 = arith.constant 0 : index
    %c0_14 = arith.constant 0 : index
    %12 = vector.load %arg3[%c0_12, %c0_13, %c0_14] : memref<2x8x12xf32, #tpu.memory_space<vmem>>, vector<1x8x12xf32>
    %13 = vector.shape_cast %12 : vector<1x8x12xf32> to vector<8x12xf32>
    %14 = vector.extract_strided_slice %13 {offsets = [0, 0], sizes = [8, 1], strides = [1, 1]} : vector<8x12xf32> to vector<8x1xf32>
    %15 = vector.extract_strided_slice %13 {offsets = [0, 1], sizes = [8, 1], strides = [1, 1]} : vector<8x12xf32> to vector<8x1xf32>
    %16 = vector.extract_strided_slice %13 {offsets = [0, 2], sizes = [8, 1], strides = [1, 1]} : vector<8x12xf32> to vector<8x1xf32>
    %17 = vector.extract_strided_slice %13 {offsets = [0, 3], sizes = [8, 1], strides = [1, 1]} : vector<8x12xf32> to vector<8x1xf32>
    %18 = vector.extract_strided_slice %13 {offsets = [0, 4], sizes = [8, 1], strides = [1, 1]} : vector<8x12xf32> to vector<8x1xf32>
    %19 = vector.extract_strided_slice %13 {offsets = [0, 5], sizes = [8, 1], strides = [1, 1]} : vector<8x12xf32> to vector<8x1xf32>
    %20 = vector.extract_strided_slice %13 {offsets = [0, 6], sizes = [8, 1], strides = [1, 1]} : vector<8x12xf32> to vector<8x1xf32>
    %21 = vector.extract_strided_slice %13 {offsets = [0, 7], sizes = [8, 1], strides = [1, 1]} : vector<8x12xf32> to vector<8x1xf32>
    %22 = vector.extract_strided_slice %13 {offsets = [0, 8], sizes = [8, 1], strides = [1, 1]} : vector<8x12xf32> to vector<8x1xf32>
    %23 = vector.extract_strided_slice %13 {offsets = [0, 9], sizes = [8, 1], strides = [1, 1]} : vector<8x12xf32> to vector<8x1xf32>
    %24 = vector.extract_strided_slice %13 {offsets = [0, 10], sizes = [8, 1], strides = [1, 1]} : vector<8x12xf32> to vector<8x1xf32>
    %25 = vector.extract_strided_slice %13 {offsets = [0, 11], sizes = [8, 1], strides = [1, 1]} : vector<8x12xf32> to vector<8x1xf32>
    %26 = vector.broadcast %14 : vector<8x1xf32> to vector<8x128xf32>
    %27 = arith.mulf %26, %1 : vector<8x128xf32>
    %28 = vector.broadcast %15 : vector<8x1xf32> to vector<8x128xf32>
    %29 = arith.mulf %28, %3 : vector<8x128xf32>
    %30 = arith.addf %27, %29 : vector<8x128xf32>
    %31 = vector.broadcast %16 : vector<8x1xf32> to vector<8x128xf32>
    %32 = arith.mulf %31, %5 : vector<8x128xf32>
    %33 = arith.addf %30, %32 : vector<8x128xf32>
    %34 = vector.broadcast %23 : vector<8x1xf32> to vector<8x128xf32>
    %35 = arith.addf %33, %34 : vector<8x128xf32>
    %c0_15 = arith.constant 0 : index
    %c0_16 = arith.constant 0 : index
    %c0_17 = arith.constant 0 : index
    %c0_18 = arith.constant 0 : index
    %36 = vector.load %arg4[%c0_15, %c0_16, %c0_17, %c0_18] : memref<2x6x8x128xf32, #tpu.memory_space<vmem>>, vector<1x1x8x128xf32>
    %37 = vector.shape_cast %36 : vector<1x1x8x128xf32> to vector<8x128xf32>
    %38 = vector.shape_cast %35 : vector<8x128xf32> to vector<1x1x8x128xf32>
    tpu.vector_store %arg4[%c0_15, %c0_16, %c0_17, %c0_18], %38 {strides = array<i32>} : memref<2x6x8x128xf32, #tpu.memory_space<vmem>>, vector<1x1x8x128xf32>,
    %39 = vector.broadcast %17 : vector<8x1xf32> to vector<8x128xf32>
    %40 = arith.mulf %39, %1 : vector<8x128xf32>
    %41 = vector.broadcast %18 : vector<8x1xf32> to vector<8x128xf32>
    %42 = arith.mulf %41, %3 : vector<8x128xf32>
    %43 = arith.addf %40, %42 : vector<8x128xf32>
    %44 = vector.broadcast %19 : vector<8x1xf32> to vector<8x128xf32>
    %45 = arith.mulf %44, %5 : vector<8x128xf32>
    %46 = arith.addf %43, %45 : vector<8x128xf32>
    %47 = vector.broadcast %24 : vector<8x1xf32> to vector<8x128xf32>
    %48 = arith.addf %46, %47 : vector<8x128xf32>
    %c0_19 = arith.constant 0 : index
    %c1_20 = arith.constant 1 : index
    %c0_21 = arith.constant 0 : index
    %c0_22 = arith.constant 0 : index
    %49 = vector.load %arg4[%c0_19, %c1_20, %c0_21, %c0_22] : memref<2x6x8x128xf32, #tpu.memory_space<vmem>>, vector<1x1x8x128xf32>
    %50 = vector.shape_cast %49 : vector<1x1x8x128xf32> to vector<8x128xf32>
    %51 = vector.shape_cast %48 : vector<8x128xf32> to vector<1x1x8x128xf32>
    tpu.vector_store %arg4[%c0_19, %c1_20, %c0_21, %c0_22], %51 {strides = array<i32>} : memref<2x6x8x128xf32, #tpu.memory_space<vmem>>, vector<1x1x8x128xf32>,
    %52 = vector.broadcast %20 : vector<8x1xf32> to vector<8x128xf32>
    %53 = arith.mulf %52, %1 : vector<8x128xf32>
    %54 = vector.broadcast %21 : vector<8x1xf32> to vector<8x128xf32>
    %55 = arith.mulf %54, %3 : vector<8x128xf32>
    %56 = arith.addf %53, %55 : vector<8x128xf32>
    %57 = vector.broadcast %22 : vector<8x1xf32> to vector<8x128xf32>
    %58 = arith.mulf %57, %5 : vector<8x128xf32>
    %59 = arith.addf %56, %58 : vector<8x128xf32>
    %60 = vector.broadcast %25 : vector<8x1xf32> to vector<8x128xf32>
    %61 = arith.addf %59, %60 : vector<8x128xf32>
    %c0_23 = arith.constant 0 : index
    %c2_24 = arith.constant 2 : index
    %c0_25 = arith.constant 0 : index
    %c0_26 = arith.constant 0 : index
    %62 = vector.load %arg4[%c0_23, %c2_24, %c0_25, %c0_26] : memref<2x6x8x128xf32, #tpu.memory_space<vmem>>, vector<1x1x8x128xf32>
    %63 = vector.shape_cast %62 : vector<1x1x8x128xf32> to vector<8x128xf32>
    %64 = vector.shape_cast %61 : vector<8x128xf32> to vector<1x1x8x128xf32>
    tpu.vector_store %arg4[%c0_23, %c2_24, %c0_25, %c0_26], %64 {strides = array<i32>} : memref<2x6x8x128xf32, #tpu.memory_space<vmem>>, vector<1x1x8x128xf32>,
    %65 = vector.broadcast %14 : vector<8x1xf32> to vector<8x128xf32>
    %66 = arith.mulf %65, %7 : vector<8x128xf32>
    %67 = vector.broadcast %15 : vector<8x1xf32> to vector<8x128xf32>
    %68 = arith.mulf %67, %9 : vector<8x128xf32>
    %69 = arith.addf %66, %68 : vector<8x128xf32>
    %70 = vector.broadcast %16 : vector<8x1xf32> to vector<8x128xf32>
    %71 = arith.mulf %70, %11 : vector<8x128xf32>
    %72 = arith.addf %69, %71 : vector<8x128xf32>
    %c0_27 = arith.constant 0 : index
    %c3_28 = arith.constant 3 : index
    %c0_29 = arith.constant 0 : index
    %c0_30 = arith.constant 0 : index
    %73 = vector.load %arg4[%c0_27, %c3_28, %c0_29, %c0_30] : memref<2x6x8x128xf32, #tpu.memory_space<vmem>>, vector<1x1x8x128xf32>
    %74 = vector.shape_cast %73 : vector<1x1x8x128xf32> to vector<8x128xf32>
    %75 = vector.shape_cast %72 : vector<8x128xf32> to vector<1x1x8x128xf32>
    tpu.vector_store %arg4[%c0_27, %c3_28, %c0_29, %c0_30], %75 {strides = array<i32>} : memref<2x6x8x128xf32, #tpu.memory_space<vmem>>, vector<1x1x8x128xf32>,
    %76 = vector.broadcast %17 : vector<8x1xf32> to vector<8x128xf32>
    %77 = arith.mulf %76, %7 : vector<8x128xf32>
    %78 = vector.broadcast %18 : vector<8x1xf32> to vector<8x128xf32>
    %79 = arith.mulf %78, %9 : vector<8x128xf32>
    %80 = arith.addf %77, %79 : vector<8x128xf32>
    %81 = vector.broadcast %19 : vector<8x1xf32> to vector<8x128xf32>
    %82 = arith.mulf %81, %11 : vector<8x128xf32>
    %83 = arith.addf %80, %82 : vector<8x128xf32>
    %c0_31 = arith.constant 0 : index
    %c4_32 = arith.constant 4 : index
    %c0_33 = arith.constant 0 : index
    %c0_34 = arith.constant 0 : index
    %84 = vector.load %arg4[%c0_31, %c4_32, %c0_33, %c0_34] : memref<2x6x8x128xf32, #tpu.memory_space<vmem>>, vector<1x1x8x128xf32>
    %85 = vector.shape_cast %84 : vector<1x1x8x128xf32> to vector<8x128xf32>
    %86 = vector.shape_cast %83 : vector<8x128xf32> to vector<1x1x8x128xf32>
    tpu.vector_store %arg4[%c0_31, %c4_32, %c0_33, %c0_34], %86 {strides = array<i32>} : memref<2x6x8x128xf32, #tpu.memory_space<vmem>>, vector<1x1x8x128xf32>,
    %87 = vector.broadcast %20 : vector<8x1xf32> to vector<8x128xf32>
    %88 = arith.mulf %87, %7 : vector<8x128xf32>
    %89 = vector.broadcast %21 : vector<8x1xf32> to vector<8x128xf32>
    %90 = arith.mulf %89, %9 : vector<8x128xf32>
    %91 = arith.addf %88, %90 : vector<8x128xf32>
    %92 = vector.broadcast %22 : vector<8x1xf32> to vector<8x128xf32>
    %93 = arith.mulf %92, %11 : vector<8x128xf32>
    %94 = arith.addf %91, %93 : vector<8x128xf32>
    %c0_35 = arith.constant 0 : index
    %c5_36 = arith.constant 5 : index
    %c0_37 = arith.constant 0 : index
    %c0_38 = arith.constant 0 : index
    %95 = vector.load %arg4[%c0_35, %c5_36, %c0_37, %c0_38] : memref<2x6x8x128xf32, #tpu.memory_space<vmem>>, vector<1x1x8x128xf32>
    %96 = vector.shape_cast %95 : vector<1x1x8x128xf32> to vector<8x128xf32>
    %97 = vector.shape_cast %94 : vector<8x128xf32> to vector<1x1x8x128xf32>
    tpu.vector_store %arg4[%c0_35, %c5_36, %c0_37, %c0_38], %97 {strides = array<i32>} : memref<2x6x8x128xf32, #tpu.memory_space<vmem>>, vector<1x1x8x128xf32>,
    %c1_39 = arith.constant 1 : index
    %c0_40 = arith.constant 0 : index
    %c0_41 = arith.constant 0 : index
    %98 = vector.load %arg3[%c1_39, %c0_40, %c0_41] : memref<2x8x12xf32, #tpu.memory_space<vmem>>, vector<1x8x12xf32>
    %99 = vector.shape_cast %98 : vector<1x8x12xf32> to vector<8x12xf32>
    %100 = vector.extract_strided_slice %99 {offsets = [0, 0], sizes = [8, 1], strides = [1, 1]} : vector<8x12xf32> to vector<8x1xf32>
    %101 = vector.extract_strided_slice %99 {offsets = [0, 1], sizes = [8, 1], strides = [1, 1]} : vector<8x12xf32> to vector<8x1xf32>
    %102 = vector.extract_strided_slice %99 {offsets = [0, 2], sizes = [8, 1], strides = [1, 1]} : vector<8x12xf32> to vector<8x1xf32>
    %103 = vector.extract_strided_slice %99 {offsets = [0, 3], sizes = [8, 1], strides = [1, 1]} : vector<8x12xf32> to vector<8x1xf32>
    %104 = vector.extract_strided_slice %99 {offsets = [0, 4], sizes = [8, 1], strides = [1, 1]} : vector<8x12xf32> to vector<8x1xf32>
    %105 = vector.extract_strided_slice %99 {offsets = [0, 5], sizes = [8, 1], strides = [1, 1]} : vector<8x12xf32> to vector<8x1xf32>
    %106 = vector.extract_strided_slice %99 {offsets = [0, 6], sizes = [8, 1], strides = [1, 1]} : vector<8x12xf32> to vector<8x1xf32>
    %107 = vector.extract_strided_slice %99 {offsets = [0, 7], sizes = [8, 1], strides = [1, 1]} : vector<8x12xf32> to vector<8x1xf32>
    %108 = vector.extract_strided_slice %99 {offsets = [0, 8], sizes = [8, 1], strides = [1, 1]} : vector<8x12xf32> to vector<8x1xf32>
    %109 = vector.extract_strided_slice %99 {offsets = [0, 9], sizes = [8, 1], strides = [1, 1]} : vector<8x12xf32> to vector<8x1xf32>
    %110 = vector.extract_strided_slice %99 {offsets = [0, 10], sizes = [8, 1], strides = [1, 1]} : vector<8x12xf32> to vector<8x1xf32>
    %111 = vector.extract_strided_slice %99 {offsets = [0, 11], sizes = [8, 1], strides = [1, 1]} : vector<8x12xf32> to vector<8x1xf32>
    %112 = vector.broadcast %100 : vector<8x1xf32> to vector<8x128xf32>
    %113 = arith.mulf %112, %1 : vector<8x128xf32>
    %114 = vector.broadcast %101 : vector<8x1xf32> to vector<8x128xf32>
    %115 = arith.mulf %114, %3 : vector<8x128xf32>
    %116 = arith.addf %113, %115 : vector<8x128xf32>
    %117 = vector.broadcast %102 : vector<8x1xf32> to vector<8x128xf32>
    %118 = arith.mulf %117, %5 : vector<8x128xf32>
    %119 = arith.addf %116, %118 : vector<8x128xf32>
    %120 = vector.broadcast %109 : vector<8x1xf32> to vector<8x128xf32>
    %121 = arith.addf %119, %120 : vector<8x128xf32>
    %c1_42 = arith.constant 1 : index
    %c0_43 = arith.constant 0 : index
    %c0_44 = arith.constant 0 : index
    %c0_45 = arith.constant 0 : index
    %122 = vector.load %arg4[%c1_42, %c0_43, %c0_44, %c0_45] : memref<2x6x8x128xf32, #tpu.memory_space<vmem>>, vector<1x1x8x128xf32>
    %123 = vector.shape_cast %122 : vector<1x1x8x128xf32> to vector<8x128xf32>
    %124 = vector.shape_cast %121 : vector<8x128xf32> to vector<1x1x8x128xf32>
    tpu.vector_store %arg4[%c1_42, %c0_43, %c0_44, %c0_45], %124 {strides = array<i32>} : memref<2x6x8x128xf32, #tpu.memory_space<vmem>>, vector<1x1x8x128xf32>,
    %125 = vector.broadcast %103 : vector<8x1xf32> to vector<8x128xf32>
    %126 = arith.mulf %125, %1 : vector<8x128xf32>
    %127 = vector.broadcast %104 : vector<8x1xf32> to vector<8x128xf32>
    %128 = arith.mulf %127, %3 : vector<8x128xf32>
    %129 = arith.addf %126, %128 : vector<8x128xf32>
    %130 = vector.broadcast %105 : vector<8x1xf32> to vector<8x128xf32>
    %131 = arith.mulf %130, %5 : vector<8x128xf32>
    %132 = arith.addf %129, %131 : vector<8x128xf32>
    %133 = vector.broadcast %110 : vector<8x1xf32> to vector<8x128xf32>
    %134 = arith.addf %132, %133 : vector<8x128xf32>
    %c1_46 = arith.constant 1 : index
    %c1_47 = arith.constant 1 : index
    %c0_48 = arith.constant 0 : index
    %c0_49 = arith.constant 0 : index
    %135 = vector.load %arg4[%c1_46, %c1_47, %c0_48, %c0_49] : memref<2x6x8x128xf32, #tpu.memory_space<vmem>>, vector<1x1x8x128xf32>
    %136 = vector.shape_cast %135 : vector<1x1x8x128xf32> to vector<8x128xf32>
    %137 = vector.shape_cast %134 : vector<8x128xf32> to vector<1x1x8x128xf32>
    tpu.vector_store %arg4[%c1_46, %c1_47, %c0_48, %c0_49], %137 {strides = array<i32>} : memref<2x6x8x128xf32, #tpu.memory_space<vmem>>, vector<1x1x8x128xf32>,
    %138 = vector.broadcast %106 : vector<8x1xf32> to vector<8x128xf32>
    %139 = arith.mulf %138, %1 : vector<8x128xf32>
    %140 = vector.broadcast %107 : vector<8x1xf32> to vector<8x128xf32>
    %141 = arith.mulf %140, %3 : vector<8x128xf32>
    %142 = arith.addf %139, %141 : vector<8x128xf32>
    %143 = vector.broadcast %108 : vector<8x1xf32> to vector<8x128xf32>
    %144 = arith.mulf %143, %5 : vector<8x128xf32>
    %145 = arith.addf %142, %144 : vector<8x128xf32>
    %146 = vector.broadcast %111 : vector<8x1xf32> to vector<8x128xf32>
    %147 = arith.addf %145, %146 : vector<8x128xf32>
    %c1_50 = arith.constant 1 : index
    %c2_51 = arith.constant 2 : index
    %c0_52 = arith.constant 0 : index
    %c0_53 = arith.constant 0 : index
    %148 = vector.load %arg4[%c1_50, %c2_51, %c0_52, %c0_53] : memref<2x6x8x128xf32, #tpu.memory_space<vmem>>, vector<1x1x8x128xf32>
    %149 = vector.shape_cast %148 : vector<1x1x8x128xf32> to vector<8x128xf32>
    %150 = vector.shape_cast %147 : vector<8x128xf32> to vector<1x1x8x128xf32>
    tpu.vector_store %arg4[%c1_50, %c2_51, %c0_52, %c0_53], %150 {strides = array<i32>} : memref<2x6x8x128xf32, #tpu.memory_space<vmem>>, vector<1x1x8x128xf32>,
    %151 = vector.broadcast %100 : vector<8x1xf32> to vector<8x128xf32>
    %152 = arith.mulf %151, %7 : vector<8x128xf32>
    %153 = vector.broadcast %101 : vector<8x1xf32> to vector<8x128xf32>
    %154 = arith.mulf %153, %9 : vector<8x128xf32>
    %155 = arith.addf %152, %154 : vector<8x128xf32>
    %156 = vector.broadcast %102 : vector<8x1xf32> to vector<8x128xf32>
    %157 = arith.mulf %156, %11 : vector<8x128xf32>
    %158 = arith.addf %155, %157 : vector<8x128xf32>
    %c1_54 = arith.constant 1 : index
    %c3_55 = arith.constant 3 : index
    %c0_56 = arith.constant 0 : index
    %c0_57 = arith.constant 0 : index
    %159 = vector.load %arg4[%c1_54, %c3_55, %c0_56, %c0_57] : memref<2x6x8x128xf32, #tpu.memory_space<vmem>>, vector<1x1x8x128xf32>
    %160 = vector.shape_cast %159 : vector<1x1x8x128xf32> to vector<8x128xf32>
    %161 = vector.shape_cast %158 : vector<8x128xf32> to vector<1x1x8x128xf32>
    tpu.vector_store %arg4[%c1_54, %c3_55, %c0_56, %c0_57], %161 {strides = array<i32>} : memref<2x6x8x128xf32, #tpu.memory_space<vmem>>, vector<1x1x8x128xf32>,
    %162 = vector.broadcast %103 : vector<8x1xf32> to vector<8x128xf32>
    %163 = arith.mulf %162, %7 : vector<8x128xf32>
    %164 = vector.broadcast %104 : vector<8x1xf32> to vector<8x128xf32>
    %165 = arith.mulf %164, %9 : vector<8x128xf32>
    %166 = arith.addf %163, %165 : vector<8x128xf32>
    %167 = vector.broadcast %105 : vector<8x1xf32> to vector<8x128xf32>
    %168 = arith.mulf %167, %11 : vector<8x128xf32>
    %169 = arith.addf %166, %168 : vector<8x128xf32>
    %c1_58 = arith.constant 1 : index
    %c4_59 = arith.constant 4 : index
    %c0_60 = arith.constant 0 : index
    %c0_61 = arith.constant 0 : index
    %170 = vector.load %arg4[%c1_58, %c4_59, %c0_60, %c0_61] : memref<2x6x8x128xf32, #tpu.memory_space<vmem>>, vector<1x1x8x128xf32>
    %171 = vector.shape_cast %170 : vector<1x1x8x128xf32> to vector<8x128xf32>
    %172 = vector.shape_cast %169 : vector<8x128xf32> to vector<1x1x8x128xf32>
    tpu.vector_store %arg4[%c1_58, %c4_59, %c0_60, %c0_61], %172 {strides = array<i32>} : memref<2x6x8x128xf32, #tpu.memory_space<vmem>>, vector<1x1x8x128xf32>,
    %173 = vector.broadcast %106 : vector<8x1xf32> to vector<8x128xf32>
    %174 = arith.mulf %173, %7 : vector<8x128xf32>
    %175 = vector.broadcast %107 : vector<8x1xf32> to vector<8x128xf32>
    %176 = arith.mulf %175, %9 : vector<8x128xf32>
    %177 = arith.addf %174, %176 : vector<8x128xf32>
    %178 = vector.broadcast %108 : vector<8x1xf32> to vector<8x128xf32>
    %179 = arith.mulf %178, %11 : vector<8x128xf32>
    %180 = arith.addf %177, %179 : vector<8x128xf32>
    %c1_62 = arith.constant 1 : index
    %c5_63 = arith.constant 5 : index
    %c0_64 = arith.constant 0 : index
    %c0_65 = arith.constant 0 : index
    %181 = vector.load %arg4[%c1_62, %c5_63, %c0_64, %c0_65] : memref<2x6x8x128xf32, #tpu.memory_space<vmem>>, vector<1x1x8x128xf32>
    %182 = vector.shape_cast %181 : vector<1x1x8x128xf32> to vector<8x128xf32>
    %183 = vector.shape_cast %180 : vector<8x128xf32> to vector<1x1x8x128xf32>
    tpu.vector_store %arg4[%c1_62, %c5_63, %c0_64, %c0_65], %183 {strides = array<i32>} : memref<2x6x8x128xf32, #tpu.memory_space<vmem>>, vector<1x1x8x128xf32>,
    return
  }
  func.func @transform_0(%arg0: i32, %arg1: i32) -> (i32, i32, i32) {
    %c0_i32 = arith.constant 0 : i32
    %c0_i32_0 = arith.constant 0 : i32
    %c0_i32_1 = arith.constant 0 : i32
    return %c0_i32, %arg0, %c0_i32_0 : i32, i32, i32
  }
  func.func @transform_1(%arg0: i32, %arg1: i32) -> (i32, i32, i32) {
    %c0_i32 = arith.constant 0 : i32
    %c0_i32_0 = arith.constant 0 : i32
    return %arg1, %arg0, %c0_i32 : i32, i32, i32
  }
  func.func @transform_2(%arg0: i32, %arg1: i32) -> (i32, i32, i32, i32) {
    %c0_i32 = arith.constant 0 : i32
    %c0_i32_0 = arith.constant 0 : i32
    %c0_i32_1 = arith.constant 0 : i32
    return %arg1, %c0_i32, %arg0, %c0_i32_0 : i32, i32, i32, i32
  }
}

</mosaic_0001>

<bundles_post_ra>
// kernel: tpu_custom_call.1
= control target key start
LH: loop header
LB: loop body
LE: loop exit
PB: predicated region body
PF: predicated region fallthrough
CT: control target
= control target key end

     0   :  { %7 = vsyncpa [#allocation3], 0  ;;  %s499_s0 = inlined_call_operand.hbm [shape: f32[6,8,128], index: 0, kind: input, shape index: {}]   ;;  %s500_s1 = inlined_call_operand.hbm [shape: f32[2,8,12], index: 1, kind: input, shape index: {}]   ;;  %s501_s2 = inlined_call_operand.hbm [shape: f32[2,6,8,128], index: 2, kind: output, shape index: {}]  }
   0x1   :  { %8 = vsyncpa [#allocation6], 0 }
   0x2   :  { %9 = vsyncpa [#allocation4], 0  ;;  %s370_s9 = smov [#allocation2]   ;;  %s298_s13 = scalar_lea.hbm %s499_s0, 768 }
   0x3   :  { %s15_s10 = sshll.u32 %s370_s9, 4  ;;  %p299_p0 = scmp.ne.s32.totalorder %s499_s0, %s298_s13  ;;  %s16_s10 = int_to_ptr.vmem [resolvable:$true] %s15_s10 }
   0x4   :  { %p302_p1 = scmp.lt.u32.totalorder %s298_s13, %s499_s0 }
   0x6   :  { %p304_p2 = pnand %p302_p1, %p299_p0 }
   0x8   :  { %307 = shalt.err (!%p304_p2)
}
   0x9   :  { %s308_s18 = scalar_lea.vmem %s16_s10, 768  ;;  %p313_p4 = scmp.lt.s32.totalorder %s16_s10, %s16_s10 }
   0xa   :  { %p309_p3 = scmp.ne.s32.totalorder %s16_s10, %s308_s18  ;;  %p314_p5 = scmp.lt.s32.totalorder %s308_s18, %s308_s18 }
   0xc   :  { %p315_p6 = por %p314_p5, %p313_p4 }
   0xe   :  { %p316_p7 = pnand %p315_p6, %p309_p3 }
  0x10   :  { %319 = shalt.err (!%p316_p7)
}
  0x11   :  { %s371_s19 = smov 128   ;;  %s372_s20 = smov 8  }
  0x12   :  { %21 = dma.hbm_to_vmem [thread:$0]  %s499_s0, 768, %s16_s10, [#allocation3], %s371_s19, %s371_s19, %s372_s20  }
  0x13   :  { %s373_s23 = smov [#allocation5]   ;;  %s320_s27 = scalar_lea.hbm %s500_s1, 256 }
  0x14   :  { %s27_s24 = sshll.u32 %s373_s23, 4  ;;  %p321_p8 = scmp.ne.s32.totalorder %s500_s1, %s320_s27  ;;  %s28_s24 = int_to_ptr.vmem [resolvable:$true] %s27_s24 }
  0x15   :  { %p324_p9 = scmp.lt.u32.totalorder %s320_s27, %s500_s1 }
  0x17   :  { %p326_p10 = pnand %p324_p9, %p321_p8 }
  0x19   :  { %329 = shalt.err (!%p326_p10)
}
  0x1a   :  { %s330_s4 = scalar_lea.vmem %s28_s24, 256  ;;  %p335_p12 = scmp.lt.s32.totalorder %s28_s24, %s28_s24 }
  0x1b   :  { %p331_p11 = scmp.ne.s32.totalorder %s28_s24, %s330_s4  ;;  %p336_p13 = scmp.lt.s32.totalorder %s330_s4, %s330_s4 }
  0x1d   :  { %p337_p0 = por %p336_p13, %p335_p12 }
  0x1f   :  { %p338_p1 = pnand %p337_p0, %p331_p11 }
  0x21   :  { %341 = shalt.err (!%p338_p1)
}
  0x22   :  { %33 = dma.hbm_to_vmem [thread:$0]  %s500_s1, 256, %s28_s24, [#allocation6], %s371_s19, %s371_s19, %s372_s20  }
  0x23   :  { %364 = dma.done.wait [#allocation3], 768  }
  0x24   :  { %365 = vsyncadd [#allocation3], 4294966528 }
  0x25   :  { %366 = dma.done.wait [#allocation6], 256  }
  0x26   :  { %367 = vsyncadd [#allocation6], 4294967040  ;;  %v374_v0 = vmov 2   ;;  %v375_v1 = vmov 0   ;;  %v51_v2 = vld [vmem:[#allocation5] sm:$0xff]  ;;  %v376_v3 = vmov 9  }
  0x27   :  { %278 = vset.pattern.permute.xlu1 %v374_v0  ;;  %276 = vset.pattern.permute.xlu0 %v375_v1  ;;  %v377_v4 = vmov 1   ;;  %v146_v5 = vld [vmem:[#allocation5 + $0x8] sm:$0xff]  ;;  %v378_v6 = vmov 3   ;;  %v379_v7 = vmov 6   ;;  %v380_v8 = vmov 4   ;;  %v432_v16 = vld [vmem:[#allocation2] sm:$0xff] }
  0x28   :  { %65 = vperm.xlu1 %278, %v51_v2   ;;  %54 = vperm.xlu0 %276, %v51_v2   ;;  %v381_v9 = vmov 7   ;;  %v382_v10 = vmov 5   ;;  %v383_v11 = vmov 10   ;;  %v384_v12 = vmov 11   ;;  %v434_v17 = vld [vmem:[#allocation2 + $0x18] sm:$0xff]  ;;  %v436_v18 = vld [vmem:[#allocation2 + $0x8] sm:$0xff] }
  0x29   :  { %v385_v13 = vmov 8   ;;  %v438_v19 = vld [vmem:[#allocation2 + $0x20] sm:$0xff]  ;;  %v442_v22 = vld [vmem:[#allocation2 + $0x10] sm:$0xff]  ;;  %v444_v23 = vld [vmem:[#allocation2 + $0x28] sm:$0xff]  ;;  %s386_s1 = smov [#allocation7]  }
  0x2a   :  { %s246_s6 = sshll.u32 %s386_s1, 4  ;;  %s247_s6 = int_to_ptr.vmem [resolvable:$true] %s246_s6 }
  0x2b   :  { %s342_s7 = scalar_lea.vmem %s247_s6, 1536  ;;  %p347_p3 = scmp.lt.s32.totalorder %s247_s6, %s247_s6 }
  0x2c   :  { %279 = vset.pattern.permute.xlu1 %v376_v3  ;;  %277 = vset.pattern.permute.xlu0 %v377_v4  ;;  %p343_p2 = scmp.ne.s32.totalorder %s247_s6, %s342_s7  ;;  %p348_p4 = scmp.lt.s32.totalorder %s342_s7, %s342_s7 }
  0x2d   :  { %71 = vperm.xlu1 %279, %v51_v2   ;;  %59 = vperm.xlu0 %277, %v51_v2  }
  0x2e   :  { %p349_p5 = por %p348_p4, %p347_p3 }
  0x30   :  { %p350_p6 = pnand %p349_p5, %p343_p2 }
  0x31   :  { %280 = vset.pattern.permute.xlu1 %v378_v6  ;;  %283 = vset.pattern.permute.xlu0 %v375_v1 }
  0x32   :  { %77 = vperm.xlu1 %280, %v51_v2   ;;  %149 = vperm.xlu0 %283, %v146_v5  }
  0x36   :  { %281 = vset.pattern.permute.xlu1 %v379_v7  ;;  %284 = vset.pattern.permute.xlu0 %v380_v8 }
  0x37   :  { %101 = vperm.xlu1 %281, %v51_v2   ;;  %82 = vperm.xlu0 %284, %v51_v2  }
  0x3b   :  { %282 = vset.pattern.permute.xlu1 %v381_v9  ;;  %178 = vperm.xlu0 %284, %v146_v5  }
  0x3c   :  { %106 = vperm.xlu1 %282, %v51_v2  }
  0x3f   :  { %289 = vset.pattern.permute.xlu0 %v382_v10 }
  0x40   :  { %285 = vset.pattern.permute.xlu1 %v377_v4  ;;  %88 = vperm.xlu0 %289, %v51_v2  }
  0x41   :  { %154 = vperm.xlu1 %285, %v146_v5  }
  0x44   :  { %184 = vperm.xlu0 %289, %v146_v5  }
  0x45   :  { %286 = vset.pattern.permute.xlu1 %v378_v6 }
  0x46   :  { %173 = vperm.xlu1 %286, %v146_v5  }
  0x48   :  { %293 = vset.pattern.permute.xlu0 %v383_v11 }
  0x49   :  { %94 = vperm.xlu0 %293, %v51_v2  }
  0x4a   :  { %287 = vset.pattern.permute.xlu1 %v379_v7 }
  0x4b   :  { %197 = vperm.xlu1 %287, %v146_v5  }
  0x4d   :  { %190 = vperm.xlu0 %293, %v146_v5  }
  0x4f   :  { %288 = vset.pattern.permute.xlu1 %v381_v9 }
  0x50   :  { %202 = vperm.xlu1 %288, %v146_v5  }
  0x51   :  { %297 = vset.pattern.permute.xlu0 %v384_v12 }
  0x54   :  { %290 = vset.pattern.permute.xlu1 %v385_v13 }
  0x55   :  { %112 = vperm.xlu1 %290, %v51_v2  }
  0x59   :  { %291 = vset.pattern.permute.xlu1 %v374_v0 }
  0x5a   :  { %160 = vperm.xlu1 %291, %v146_v5  }
  0x5e   :  { %292 = vset.pattern.permute.xlu1 %v385_v13 }
  0x5f   :  { %208 = vperm.xlu1 %292, %v146_v5  }
  0x63   :  { %294 = vset.pattern.permute.xlu1 %v384_v12 }
  0x64   :  { %118 = vperm.xlu1 %294, %v51_v2  }
  0x68   :  { %295 = vset.pattern.permute.xlu1 %v376_v3 }
  0x69   :  { %166 = vperm.xlu1 %295, %v146_v5  }
  0x6d   :  { %296 = vset.pattern.permute.xlu1 %v384_v12 }
  0x6e   :  { %214 = vperm.xlu1 %296, %v146_v5  }
  0xa7   :  { %v66_v14 = vpop.permute.xlu1 %65  ;;  %v55_v15 = vpop.permute.xlu0 %54 }
  0xa8   :  { %v57_v20 = vmul.f32 %v55_v15, %v432_v16  ;;  %v124_v21 = vmul.f32 %v55_v15, %v434_v17  ;;  %v68_v28 = vmul.f32 %v66_v14, %v442_v22  ;;  %v127_v29 = vmul.f32 %v66_v14, %v444_v23 }
  0xac   :  { %v72_v24 = vpop.permute.xlu1 %71  ;;  %v60_v25 = vpop.permute.xlu0 %59 }
  0xad   :  { %v62_v26 = vmul.f32 %v60_v25, %v436_v18  ;;  %v125_v27 = vmul.f32 %v60_v25, %v438_v19 }
  0xaf   :  { %v63_v30 = vadd.f32 %v62_v26, %v57_v20  ;;  %v126_v31 = vadd.f32 %v125_v27, %v124_v21 }
  0xb1   :  { %v69_v32 = vadd.f32 %v68_v28, %v63_v30  ;;  %v128_v33 = vadd.f32 %v127_v29, %v126_v31  ;;  %v78_v34 = vpop.permute.xlu1 %77  ;;  %v450_v35 = vpop.permute.xlu0 %149 }
  0xb2   :  { %v131_v42 = vmul.f32 %v78_v34, %v434_v17  ;;  %v80_v49 = vmul.f32 %v78_v34, %v432_v16  ;;  %v220_v12 = vmul.f32 %v450_v35, %v434_v17  ;;  %v152_v34 = vmul.f32 %v450_v35, %v432_v16 }
  0xb3   :  { %v74_v36 = vadd.f32 %v72_v24, %v69_v32  ;;  %130 = vst [vmem:[#allocation7 + $0x18] sm:$0xff] %v128_v33 }
  0xb5   :  { %75 = vst [vmem:[#allocation7] sm:$0xff] %v74_v36 }
  0xb6   :  { %v102_v37 = vpop.permute.xlu1 %101  ;;  %v83_v38 = vpop.permute.xlu0 %82 }
  0xb7   :  { %v132_v41 = vmul.f32 %v83_v38, %v438_v19  ;;  %v85_v47 = vmul.f32 %v83_v38, %v436_v18  ;;  %v138_v8 = vmul.f32 %v102_v37, %v434_v17  ;;  %v104_v28 = vmul.f32 %v102_v37, %v432_v16 }
  0xb9   :  { %v133_v44 = vadd.f32 %v132_v41, %v131_v42  ;;  %v86_v54 = vadd.f32 %v85_v47, %v80_v49 }
  0xba   :  { %v179_v39 = vpop.permute.xlu0 %178 }
  0xbb   :  { %v107_v40 = vpop.permute.xlu1 %106  ;;  %v181_v52 = vmul.f32 %v179_v39, %v436_v18  ;;  %v228_v53 = vmul.f32 %v179_v39, %v438_v19 }
  0xbc   :  { %v139_v7 = vmul.f32 %v107_v40, %v438_v19  ;;  %v109_v25 = vmul.f32 %v107_v40, %v436_v18 }
  0xbe   :  { %v140_v10 = vadd.f32 %v139_v7, %v138_v8  ;;  %v110_v33 = vadd.f32 %v109_v25, %v104_v28 }
  0xbf   :  { %v89_v43 = vpop.permute.xlu0 %88 }
  0xc0   :  { %v134_v45 = vmul.f32 %v89_v43, %v444_v23  ;;  %v155_v46 = vpop.permute.xlu1 %154  ;;  %v91_v50 = vmul.f32 %v89_v43, %v442_v22 }
  0xc1   :  { %v221_v13 = vmul.f32 %v155_v46, %v438_v19 }
  0xc2   :  { %v135_v48 = vadd.f32 %v134_v45, %v133_v44  ;;  %v92_v60 = vadd.f32 %v91_v50, %v86_v54 }
  0xc3   :  { %v185_v51 = vpop.permute.xlu0 %184  ;;  %v222_v20 = vadd.f32 %v221_v13, %v220_v12 }
  0xc4   :  { %137 = vst [vmem:[#allocation7 + $0x20] sm:$0xff] %v135_v48  ;;  %v187_v56 = vmul.f32 %v185_v51, %v442_v22  ;;  %v230_v57 = vmul.f32 %v185_v51, %v444_v23 }
  0xc5   :  { %v174_v55 = vpop.permute.xlu1 %173 }
  0xc6   :  { %v176_v58 = vmul.f32 %v174_v55, %v432_v16  ;;  %v227_v59 = vmul.f32 %v174_v55, %v434_v17 }
  0xc8   :  { %v182_v61 = vadd.f32 %v181_v52, %v176_v58  ;;  %v229_v62 = vadd.f32 %v228_v53, %v227_v59  ;;  %v95_v63 = vpop.permute.xlu0 %94 }
  0xc9   :  { %v97_v0 = vadd.f32 %v95_v63, %v92_v60 }
  0xca   :  { %v231_v1 = vadd.f32 %v230_v57, %v229_v62  ;;  %v198_v2 = vpop.permute.xlu1 %197  ;;  %v188_v3 = vadd.f32 %v187_v56, %v182_v61 }
  0xcb   :  { %99 = vst [vmem:[#allocation7 + $0x8] sm:$0xff] %v97_v0  ;;  %v234_v27 = vmul.f32 %v198_v2, %v434_v17 }
  0xcc   :  { %233 = vst [vmem:[#allocation7 + $0x50] sm:$0xff] %v231_v1  ;;  %v191_v4 = vpop.permute.xlu0 %190 }
  0xcd   :  { %v193_v5 = vadd.f32 %v191_v4, %v188_v3 }
  0xcf   :  { %195 = vst [vmem:[#allocation7 + $0x38] sm:$0xff] %v193_v5  ;;  %v203_v6 = vpop.permute.xlu1 %202 }
  0xd0   :  { %v235_v24 = vmul.f32 %v203_v6, %v438_v19  ;;  %v157_v19 = vmul.f32 %v155_v46, %v436_v18  ;;  %v205_v41 = vmul.f32 %v203_v6, %v436_v18 }
  0xd2   :  { %v236_v31 = vadd.f32 %v235_v24, %v234_v27  ;;  %v158_v40 = vadd.f32 %v157_v19, %v152_v34 }
  0xd4   :  { %v113_v9 = vpop.permute.xlu1 %112 }
  0xd5   :  { %v141_v11 = vmul.f32 %v113_v9, %v444_v23  ;;  %v115_v29 = vmul.f32 %v113_v9, %v442_v22 }
  0xd7   :  { %v142_v14 = vadd.f32 %v141_v11, %v140_v10  ;;  %v116_v38 = vadd.f32 %v115_v29, %v110_v33 }
  0xd9   :  { %144 = vst [vmem:[#allocation7 + $0x28] sm:$0xff] %v142_v14  ;;  %v161_v15 = vpop.permute.xlu1 %160 }
  0xda   :  { %v223_v21 = vmul.f32 %v161_v15, %v444_v23  ;;  %v163_v39 = vmul.f32 %v161_v15, %v442_v22 }
  0xdc   :  { %v224_v26 = vadd.f32 %v223_v21, %v222_v20  ;;  %v164_v42 = vadd.f32 %v163_v39, %v158_v40 }
  0xde   :  { %226 = vst [vmem:[#allocation7 + $0x48] sm:$0xff] %v224_v26  ;;  %v209_v30 = vpop.permute.xlu1 %208 }
  0xdf   :  { %v237_v32 = vmul.f32 %v209_v30, %v444_v23  ;;  %v200_v23 = vmul.f32 %v198_v2, %v432_v16  ;;  %v211_v43 = vmul.f32 %v209_v30, %v442_v22 }
  0xe1   :  { %v238_v36 = vadd.f32 %v237_v32, %v236_v31  ;;  %v206_v45 = vadd.f32 %v205_v41, %v200_v23 }
  0xe3   :  { %240 = vst [vmem:[#allocation7 + $0x58] sm:$0xff] %v238_v36  ;;  %v119_v17 = vpop.permute.xlu1 %118  ;;  %v212_v46 = vadd.f32 %v211_v43, %v206_v45 }
  0xe4   :  { %v121_v37 = vadd.f32 %v119_v17, %v116_v38 }
  0xe6   :  { %123 = vst [vmem:[#allocation7 + $0x10] sm:$0xff] %v121_v37 }
  0xe8   :  { %v167_v44 = vpop.permute.xlu1 %166 }
  0xe9   :  { %v169_v35 = vadd.f32 %v167_v44, %v164_v42 }
  0xeb   :  { %171 = vst [vmem:[#allocation7 + $0x30] sm:$0xff] %v169_v35 }
  0xed   :  { %v215_v47 = vpop.permute.xlu1 %214 }
  0xee   :  { %v217_v48 = vadd.f32 %v215_v47, %v212_v46 }
  0xf0   :  { %219 = vst [vmem:[#allocation7 + $0x40] sm:$0xff] %v217_v48 }
  0xf1   :  { %353 = shalt.err (!%p350_p6)
}
  0xf2   :  { %s354_s10 = scalar_lea.hbm %s501_s2, 1536 }
  0xf3   :  { %p355_p7 = scmp.ne.s32.totalorder %s501_s2, %s354_s10  ;;  %p358_p8 = scmp.lt.u32.totalorder %s354_s10, %s501_s2 }
  0xf5   :  { %p360_p9 = pnand %p358_p8, %p355_p7 }
  0xf7   :  { %363 = shalt.err (!%p360_p9)
}
  0xf8   :  { %252 = dma.vmem_to_hbm [thread:$0]  %s247_s6, 1536, %s501_s2, [#allocation4], %s371_s19, %s371_s19, %s372_s20  }
  0xf9   :  { %368 = dma.done.wait [#allocation4], 1536  }
  0xfa   :  { %369 = vsyncadd [#allocation4], 4294965760 }
  0xfb   :  { %256 = vsyncpa [#allocation3], 1 }
  0xfc   :  { %257 = vsyncpa [#allocation6], 1 }
  0xfd   :  { %258 = vsyncpa [#allocation4], 1 }

</bundles_post_ra>
